<compile_context>
chip_gen: v7x
topology: tpu7x:2x2x1
jax: 0.10.0
libtpu: 0.0.40
codegen_flags: <defaults>
</compile_context>

<pallas_src>
import functools

import jax
import jax.numpy as jnp
from jax.experimental import pallas as pl
from jax.experimental.pallas import tpu as pltpu

_MAX_TILE_COLS = 8192                   # large multiple of 128 (lane-dense)
_TARGET_TILE_BYTES = 3 * 1024 * 1024    # ~3 MiB per tile (~12 MiB w/ dbl-buffer)
_VMEM_LIMIT_BYTES = 32 * 1024 * 1024    # safe on v5e / v6e / v7x alike


def _neg_kernel(x_ref, o_ref):
    # Elementwise polarity inversion on the current VMEM tile (VPU).
    o_ref[...] = -x_ref[...]


@functools.lru_cache(maxsize=1)
def _has_multiple_tensorcores() -> bool:
    """Best-effort: True when one JAX device spans >1 TensorCore (v4/v5p
    megacore, v7x).  Defaults to True: a needless split costs one ~0.35 us
    grid step, while a missing split idles a whole core."""
    try:
        kind = (jax.devices()[0].device_kind or "").lower()
    except Exception:
        return True
    single_tc_markers = ("v5e", "v5 lite", "v5lite", "v6e", "v6 lite", "v6lite",
                         "lite", "v2", "v3")
    return not any(m in kind for m in single_tc_markers)


def _as_2d_slab(audio: jax.Array) -> jax.Array:
    """Reshape (free, no data movement) to a lane-dense 2-D (rows, cols) slab."""
    n = audio.size
    # Prefer a wide, 128-multiple lane dim that divides the element count
    # exactly: no padding/slicing is needed and all stores are unmasked.
    for c in (8192, 4096, 2048, 1024, 512, 256, 128):
        if n % c == 0:
            return audio.reshape(-1, c)
    # Fallback (n not a multiple of 128): keep the natural trailing extent,
    # folding trailing dims until the lane axis is >= 128 wide so only the
    # edge vreg column / edge block carries masked stores.
    if audio.ndim >= 2:
        shape = list(audio.shape)
        cols = shape[-1]
        left = len(shape) - 1
        while cols < 128 and left >= 1:
            cols *= shape[left - 1]
            left -= 1
        return audio.reshape(-1, cols)
    return audio.reshape(1, -1)


def polarity_inversion(audio: jax.Array, *, donate: bool = False) -> jax.Array:
    """Negate `audio` with a Pallas TPU kernel.  Works for any rank/dtype.

    Set `donate=True` only when the caller no longer needs the input buffer
    (typical in an augmentation pipeline); it aliases input 0 to output 0.
    """
    orig_shape = audio.shape
    dtype = audio.dtype
    n = int(audio.size)
    if n == 0:
        return audio

    x2d = _as_2d_slab(audio)
    rows, cols = x2d.shape
    itemsize = jnp.dtype(dtype).itemsize
    # Sub-32-bit dtypes pack along the sublane axis: 8 (f32) / 16 (bf16) / 32 (i8).
    sublane = max(8, 32 // itemsize)

    # Lane (last-dim) tile: full extent when it fits (exempt from the 128
    # rule), else a large multiple of 128 with a ragged (masked) edge block.
    tile_cols = cols if cols <= _MAX_TILE_COLS else _MAX_TILE_COLS

    # Sublane (row) tile: multiple of `sublane`, sized to ~3 MiB.
    if rows <= sublane:
        tile_rows = rows                                    # full extent
    else:
        tr = (_TARGET_TILE_BYTES // (tile_cols * itemsize)) // sublane * sublane
        tr = max(sublane, tr)
        tile_rows = rows if tr >= rows else tr

    # Multi-TensorCore chips: never leave the grid at a single block, or one
    # core idles.  Prefer splitting rows (keeps stores lane-dense); fall back
    # to columns.  Skipped on single-TC chips (pure overhead there).
    if _has_multiple_tensorcores() and pl.cdiv(rows, tile_rows) * pl.cdiv(cols, tile_cols) == 1:
        half_r = (rows // 2) // sublane * sublane
        half_c = (cols // 2) // 128 * 128
        if half_r >= sublane:
            tile_rows = half_r
        elif half_c >= 128:
            tile_cols = half_c

    grid = (pl.cdiv(rows, tile_rows), pl.cdiv(cols, tile_cols))

    out2d = pl.pallas_call(
        _neg_kernel,
        out_shape=jax.ShapeDtypeStruct((rows, cols), dtype),
        grid_spec=pltpu.PrefetchScalarGridSpec(
            num_scalar_prefetch=0,
            grid=grid,
            in_specs=[pl.BlockSpec((tile_rows, tile_cols), lambda i, j: (i, j))],
            out_specs=pl.BlockSpec((tile_rows, tile_cols), lambda i, j: (i, j)),
        ),
        compiler_params=pltpu.CompilerParams(
            dimension_semantics=("parallel", "parallel"),
            vmem_limit_bytes=_VMEM_LIMIT_BYTES),
        cost_estimate=pl.CostEstimate(
            flops=n, transcendentals=0, bytes_accessed=2 * n * itemsize),
        input_output_aliases=({0: 0} if donate else {}),
    )(x2d)

    return out2d.reshape(orig_shape)


if __name__ == "__main__":
    key = jax.random.PRNGKey(0)
    k1, k2, k3 = jax.random.split(key, 3)

    # (batch=2, channels=4, samples=2048) f32 — clean lane-dense path.
    a = jax.random.normal(k1, (2, 4, 2048), dtype=jnp.float32)
    # (batch=3, channels=2, samples=1000) bf16 — non-128-divisible fallback.
    b = jax.random.normal(k2, (3, 2, 1000), dtype=jnp.bfloat16)
    # (batch=2, channels=1, samples=4096) f32 — exercises the donate path.
    c = jax.random.normal(k3, (2, 1, 4096), dtype=jnp.float32)

    for x in (a, b):
        y = jax.block_until_ready(polarity_inversion(x))
        assert y.shape == x.shape and y.dtype == x.dtype
        assert jnp.array_equal(y, -x)

    expected_c = jax.block_until_ready(jnp.negative(c))
    y_c = jax.block_until_ready(polarity_inversion(c, donate=True))
    assert y_c.shape == c.shape and y_c.dtype == c.dtype
    assert jnp.array_equal(y_c, expected_c)

    print("KERNEL_OK")
</pallas_src>

<mosaic_0001>
module attributes {stable_mosaic.version = 11 : i64} {
  func.func @_neg_kernel(%arg0: i32, %arg1: i32, %arg2: memref<2x4096xf32, #tpu.memory_space<vmem>>, %arg3: memref<2x4096xf32, #tpu.memory_space<vmem>>) attributes {dimension_semantics = [#tpu.dimension_semantics<parallel>, #tpu.dimension_semantics<parallel>], iteration_bounds = array<i64: 1, 2>, scalar_prefetch = 0 : i64, scratch_operands = 0 : i64, tpu.core_type = #tpu.core_type<tc>, window_params = [{transform_indices = @transform_0, window_bounds = array<i64: 2, 4096>}, {transform_indices = @transform_1, window_bounds = array<i64: 2, 4096>}]} {
    %c0 = arith.constant 0 : index
    %c0_0 = arith.constant 0 : index
    %0 = vector.load %arg2[%c0, %c0_0] : memref<2x4096xf32, #tpu.memory_space<vmem>>, vector<2x4096xf32>
    %cst = arith.constant 0.000000e+00 : f32
    %1 = vector.broadcast %cst : f32 to vector<2x4096xf32>
    %2 = arith.subf %1, %0 : vector<2x4096xf32>
    %c0_1 = arith.constant 0 : index
    %c0_2 = arith.constant 0 : index
    %3 = vector.load %arg3[%c0_1, %c0_2] : memref<2x4096xf32, #tpu.memory_space<vmem>>, vector<2x4096xf32>
    tpu.vector_store %arg3[%c0_1, %c0_2], %2 {strides = array<i32>} : memref<2x4096xf32, #tpu.memory_space<vmem>>, vector<2x4096xf32>,
    return
  }
  func.func @transform_0(%arg0: i32, %arg1: i32) -> (i32, i32) {
    %c0_i32 = arith.constant 0 : i32
    return %arg0, %arg1 : i32, i32
  }
  func.func @transform_1(%arg0: i32, %arg1: i32) -> (i32, i32) {
    %c0_i32 = arith.constant 0 : i32
    return %arg0, %arg1 : i32, i32
  }
}

</mosaic_0001>

<bundles_post_ra>
// kernel: tpu_custom_call.1
= control target key start
LH: loop header
LB: loop body
LE: loop exit
PB: predicated region body
PF: predicated region fallthrough
CT: control target
= control target key end

     0   :  { %6 = vsyncpa [#allocation3], 0  ;;  %s655_s0 = inlined_call_operand.hbm [shape: f32[2,8192], index: 0, kind: input, shape index: {}]   ;;  %s656_s1 = inlined_call_operand.hbm [shape: f32[2,8192], index: 1, kind: output, shape index: {}]  }
   0x1   :  { %8 = vsyncpa [#allocation3 + $0x1], 0 }
   0x2   :  { %9 = vsyncpa [#allocation4], 0 }
   0x3   :  { %11 = vsyncpa [#allocation4 + $0x1], 0  ;;  %s483_s6 = smov 0   ;;  %s485_s7 = smov 0  }
   0x4   :  { %s487_s8 = smov 0   ;;  %s489_s9 = smov 0  }
   0x5   :  { %s491_s10 = smov 0   ;;  %s493_s11 = smov 0  }
   0x6 LB: > { %s278_s12 = sadd.s32 4294967295, %s469_s11   ;;  %s279_s13 = sadd.s32 4294967294, %s469_s11   ;;  %s469_s11 = sphi %s493_s11, %s17_s11   ;;  %s465_s10 = sphi %s491_s10, %s672_s10   ;;  %s461_s9 = sphi %s489_s9, %s671_s9   ;;  %s457_s8 = sphi %s487_s8, %s670_s8   ;;  %s453_s7 = sphi %s485_s7, %s669_s7   ;;  %s449_s6 = sphi %s483_s6, %s668_s6  }
   0x7   : > { %s26_s14 = sadd.s32 1, %s465_s10  ;;  %s38_s15 = sadd.s32 1, %s457_s8 }
   0x8   : > { %p27_p0 = scmp.ge.s32.totalorder %s26_s14, 2  ;;  %p45_p1 = scmp.ne.s32.totalorder %s457_s8, %s453_s7 }
   0x9   : > { %p46_p2 = scmp.eq.s32.totalorder %s469_s11, 0  ;;  %p51_p3 = scmp.ne.s32.totalorder %s453_s7, %s449_s6 }
   0xa   : > { %s674_s14 = smov (%p27_p0, %s26_s14), 0  ;;  %p52_p5 = scmp.eq.s32.totalorder %s278_s12, 0 }
   0xb   : > { %p524_p4 = por %p46_p2, %p45_p1  ;;  %s34_s17 = ssub.s32 %s465_s10, %s674_s14 }
   0xc   : > { %p77_p6 = scmp.eq.s32.totalorder %s278_s12, 1  ;;  %p36_p7 = scmp.eq.s32.totalorder %s34_s17, 0 }
   0xd   : > { %p530_p8 = por %p52_p5, %p51_p3  ;;  %p83_p10 = scmp.eq.s32.totalorder %s279_s13, 1 }
   0xe   : > { %p534_p9 = por %p77_p6, %p45_p1  ;;  %p307_p13 = scmp.lt.s32.totalorder %s469_s11, 2 }
   0xf   : > { %s539_s20 = scalar_select %p36_p7, %s457_s8, %s38_s15  }
  0x10   : > { %s660_s19 = scalar_select %p534_p9, 1, 0 }
  0x11   : > { %p541_p11 = por %p83_p10, %p51_p3  ;;  %s103_s22 = sand.u32 1, %s457_s8  }
  0x12   : > { %s282_s23 = sshll.u32 %s103_s22, 6  ;;  %s293_s24 = sshll.u32 %s465_s10, 10 }
  0x13   : > { %s661_s21 = scalar_select %p541_p11, 1, 0 }
  0x14   : > { %s552_s27 = scalar_lea.hbm %s655_s0, %s293_s24  ;;  %s107_s28 = scalar_lea.vmem [#allocation2], %s282_s23 }
  0x15   : > { %s117_s29 = sshll.u32 %s107_s28, 4  ;;  %p558_p0 = pnand %p307_p13, %p524_p4  ;;  %s554_s29 = int_to_ptr.vmem [resolvable:$true] %s117_s29 }
  0x16   : > { %s104_s2 = scalar_lea.sflag [#allocation3], %s103_s22  ;;  %s357_s3 = scalar_lea.hbm %s552_s27, 1024 }
  0x17   : > { %p358_p3 = scmp.ne.s32.totalorder %s552_s27, %s357_s3  ;;  %p359_p5 = pneg %p558_p0 }
  0x18   : > { %s362_s12 = scalar_lea.hbm %s655_s0, 2048  ;;  %p363_p4 = scmp.lt.u32.totalorder %s552_s27, %s655_s0 }
  0x19   : > { %p360_p6 = pnand %p359_p5, %p358_p3  ;;  %p364_p10 = scmp.lt.u32.totalorder %s362_s12, %s357_s3 }
  0x1a   : > { %p366_p12 = scmp.lt.u32.totalorder %s357_s3, %s552_s27 }
  0x1b   : > { %p361_p7 = pneg %p360_p6  ;;  %p365_p13 = por %p364_p10, %p363_p4 }
  0x1d   : > { %p367_p1 = por %p366_p12, %p365_p13 }
  0x1f   : > { %p368_p2 = pnand %p367_p1, %p361_p7 }
  0x21   : > { %371 = shalt.err (!%p368_p2)
}
  0x22   : > { %s372_s16 = scalar_lea.vmem %s554_s29, 1024  ;;  %s471_s17 = smov [#allocation2]  }
  0x23   : > { %p373_p3 = scmp.ne.s32.totalorder %s554_s29, %s372_s16  ;;  %s377_s22 = sshll.u32 %s471_s17, 4  ;;  %s378_s22 = int_to_ptr.vmem [resolvable:$false] %s377_s22 }
  0x24   : > { %s379_s23 = scalar_lea.vmem %s378_s22, 2048  ;;  %p380_p9 = scmp.lt.s32.totalorder %s554_s29, %s378_s22 }
  0x25   : > { %p375_p6 = pnand %p373_p3, %p359_p5  ;;  %p381_p4 = scmp.lt.s32.totalorder %s379_s23, %s372_s16 }
  0x27   : > { %p376_p11 = pneg %p375_p6  ;;  %p382_p10 = por %p381_p4, %p380_p9 }
  0x29   : > { %p383_p12 = pnand %p382_p10, %p376_p11 }
  0x2b   : > { %386 = shalt.err (!%p383_p12)
}
  0x2c   : > { %302 = dma.hbm_to_vmem [thread:$0]  (!%p558_p0), %s552_s27, 1024, %s554_s29, %s104_s2  }
  0x2d   : > { %p663_p1 = scmp.lt.s32.totalorder %s469_s11, 3  ;;  %p664_p2 = scmp.ge.s32.totalorder %s469_s11, 1 }
  0x2f   : > { %p123_p5 = pnand %p664_p2, %p663_p1 }
  0x30   : > { %s594_s24 = sand.u32 (!%p123_p5), 1, %s453_s7  }
  0x31   : > { %126 = sbr.rel (%p123_p5) target bundleno = 84 (0x54), region = 24  ;;  %s286_s25 = sshll.u32 (!%p123_p5), %s594_s24, 6 }
  0x32   : > { %s129_s26 = scalar_lea.sflag (!%p123_p5), [#allocation3], %s594_s24  ;;  %s132_s28 = scalar_lea.vmem (!%p123_p5), [#allocation2], %s286_s25 }
  0x38   : > { %440 = dma.done.wait (%p530_p8), %s129_s26, 1024  }
  0x39   : > { %442 = vsyncadd (%p530_p8), %s129_s26, 4294966272  ;;  %v153_v0 = vld [vmem:[%s132_s28] sm:$0xff]  ;;  %v154_v1 = vld [vmem:[%s132_s28 + $0x8] sm:$0xff]  ;;  %s294_s27 = sshll.u32 %s461_s9, 10  ;;  %s150_s29 = scalar_lea.vmem [#allocation5], %s286_s25 }
  0x3a   : > { %v155_v2 = vld [vmem:[%s132_s28 + $0x10] sm:$0xff]  ;;  %s194_s30 = sshll.u32 %s150_s29, 4  ;;  %v161_v3 = vsub.f32 0.0, %v153_v0  ;;  %v162_v4 = vsub.f32 0.0, %v154_v1  ;;  %v156_v6 = vld [vmem:[%s132_s28 + $0x18] sm:$0xff]  ;;  %v157_v7 = vld [vmem:[%s132_s28 + $0x20] sm:$0xff]  ;;  %s606_s2 = scalar_lea.hbm %s656_s1, %s294_s27  ;;  %s608_s30 = int_to_ptr.vmem [resolvable:$true] %s194_s30 }
  0x3b   : > { %v163_v5 = vsub.f32 0.0, %v155_v2  ;;  %v158_v8 = vld [vmem:[%s132_s28 + $0x28] sm:$0xff]  ;;  %v164_v9 = vsub.f32 0.0, %v156_v6  ;;  %v165_v10 = vsub.f32 0.0, %v157_v7  ;;  %v159_v12 = vld [vmem:[%s132_s28 + $0x30] sm:$0xff]  ;;  %v160_v13 = vld [vmem:[%s132_s28 + $0x38] sm:$0xff] }
  0x3c   : > { %v166_v11 = vsub.f32 0.0, %v158_v8  ;;  %169 = vst [vmem:[%s150_s29] sm:$0xff] %v161_v3  ;;  %170 = vst [vmem:[%s150_s29 + $0x8] sm:$0xff] %v162_v4  ;;  %v167_v14 = vsub.f32 0.0, %v159_v12  ;;  %v168_v15 = vsub.f32 0.0, %v160_v13  ;;  %s178_s3 = scalar_lea.sflag [#allocation4], %s594_s24  ;;  %s387_s4 = scalar_lea.vmem %s608_s30, 1024 }
  0x3d   : > { %171 = vst [vmem:[%s150_s29 + $0x10] sm:$0xff] %v163_v5  ;;  %172 = vst [vmem:[%s150_s29 + $0x18] sm:$0xff] %v164_v9  ;;  %p388_p8 = scmp.ne.s32.totalorder %s608_s30, %s387_s4  ;;  %p665_p9 = scmp.ne.s32.totalorder %s660_s19, 0 }
  0x3e   : > { %173 = vst [vmem:[%s150_s29 + $0x20] sm:$0xff] %v165_v10  ;;  %174 = vst [vmem:[%s150_s29 + $0x28] sm:$0xff] %v166_v11  ;;  %s472_s5 = smov [#allocation5]  }
  0x3f   : > { %175 = vst [vmem:[%s150_s29 + $0x30] sm:$0xff] %v167_v14  ;;  %176 = vst [vmem:[%s150_s29 + $0x38] sm:$0xff] %v168_v15  ;;  %p389_p11 = pnand %p388_p8, %p665_p9  ;;  %s391_s12 = sshll.u32 %s472_s5, 4  ;;  %s392_s12 = int_to_ptr.vmem [resolvable:$false] %s391_s12 }
  0x40   : > { %s393_s13 = scalar_lea.vmem %s392_s12, 2048  ;;  %p394_p7 = scmp.lt.s32.totalorder %s608_s30, %s392_s12 }
  0x41   : > { %p390_p0 = pneg %p389_p11  ;;  %p395_p13 = scmp.lt.s32.totalorder %s393_s13, %s387_s4 }
  0x43   : > { %p396_p3 = por %p395_p13, %p394_p7 }
  0x45   : > { %p397_p6 = pnand %p396_p3, %p390_p0 }
  0x47   : > { %400 = shalt.err (!%p397_p6)
}
  0x48   : > { %s401_s15 = scalar_lea.hbm %s606_s2, 1024  ;;  %s405_s22 = scalar_lea.hbm %s656_s1, 2048 }
  0x49   : > { %p402_p4 = scmp.ne.s32.totalorder %s606_s2, %s401_s15  ;;  %p406_p1 = scmp.lt.u32.totalorder %s606_s2, %s656_s1 }
  0x4a   : > { %p407_p2 = scmp.lt.u32.totalorder %s405_s22, %s401_s15  ;;  %p409_p8 = scmp.lt.u32.totalorder %s401_s15, %s606_s2 }
  0x4b   : > { %p403_p10 = pnand %p402_p4, %p665_p9 }
  0x4c   : > { %p408_p5 = por %p407_p2, %p406_p1 }
  0x4d   : > { %p404_p12 = pneg %p403_p10 }
  0x4e   : > { %p410_p11 = por %p409_p8, %p408_p5 }
  0x50   : > { %p411_p0 = pnand %p410_p11, %p404_p12 }
  0x52   : > { %414 = shalt.err (!%p411_p0)
}
  0x53   : > { %297 = dma.vmem_to_hbm [thread:$0]  (%p665_p9), %s608_s30, 1024, %s606_s2, %s178_s3  }
  0x54 PF: > { %s206_s25 = sand.u32 1, %s449_s6   ;;  %p666_p7 = scmp.ne.s32.totalorder %s661_s21, 0 }
  0x55   : > { %p667_p13 = scmp.ge.s32.totalorder %s469_s11, 2  ;;  %s207_s26 = scalar_lea.sflag [#allocation4], %s206_s25 }
  0x57   : > { %p304_p3 = pnand %p667_p13, %p666_p7 }
  0x59   : > { %444 = dma.done.wait (!%p304_p3), %s207_s26, 1024  }
  0x5a   : > { %446 = vsyncadd (!%p304_p3), %s207_s26, 4294966272  ;;  %s17_s11 = sadd.s32 1, %s469_s11   ;;  %s668_s6 = smov %s453_s7 }
  0x5b   : > { %p14_p6 = scmp.ge.s32.totalorder %s17_s11, 4   ;;  %s669_s7 = smov %s457_s8 }
  0x5c   : > { %s670_s8 = smov %s539_s20  ;;  %s671_s9 = smov %s465_s10 }
  0x5d   : > { %s672_s10 = smov %s674_s14  ;;  %16 = sbr.rel (!%p14_p6) target bundleno = 6 (0x6), region = 69 }
  0x64   :  { %212 = vsyncpa [#allocation3], 1 }
  0x65   :  { %214 = vsyncpa [#allocation3 + $0x1], 1 }
  0x66   :  { %215 = vsyncpa [#allocation4], 1 }
  0x67   :  { %217 = vsyncpa [#allocation4 + $0x1], 1 }

</bundles_post_ra>
